<compile_context>
chip_gen: v7x
topology: tpu7x:2x2x1
jax: 0.10.0
libtpu: 0.0.40
codegen_flags: <defaults>
</compile_context>

<pallas_src>
import functools

import jax
import jax.numpy as jnp
from jax.experimental import pallas as pl
from jax.experimental.pallas import tpu as pltpu


def _layernorm_kernel(x_ref, wb_ref, o_ref, *, eps: float, hidden: int):
    # x_ref: (block_rows, hidden) tile in VMEM (edge block may be read-padded;
    # padded rows are independent and the store is masked, so that is safe).
    # wb_ref: (2, hidden) f32 -- row 0 = weight, row 1 = bias.
    x = x_ref[...].astype(jnp.float32)

    inv_h = jnp.float32(1.0 / hidden)
    # Two-pass mean / biased variance (numerically robust, matches PyTorch).
    mean = jnp.sum(x, axis=-1, keepdims=True) * inv_h
    xc = x - mean
    var = jnp.sum(xc * xc, axis=-1, keepdims=True) * inv_h
    inv_std = jax.lax.rsqrt(var + jnp.float32(eps))

    w = wb_ref[0:1, :]  # (1, hidden) f32, broadcast over rows
    b = wb_ref[1:2, :]  # (1, hidden) f32

    o_ref[...] = (xc * inv_std * w + b).astype(o_ref.dtype)


_MAX_BLOCK_ROWS = 1024


def _round_up(x: int, m: int) -> int:
    return ((x + m - 1) // m) * m


@functools.lru_cache(maxsize=None)
def _scoped_vmem_limit_bytes() -> int:
    """Chip-aware scoped VMEM limit: 48 MiB on v5e/v6e, 32 MiB on v7x."""
    try:
        cap = pltpu.get_tpu_info().vmem_capacity_bytes
    except Exception:
        cap = 64 * 1024 * 1024  # unknown -> be conservative (v7x-safe)
    if cap >= 100 * 1024 * 1024:      # v5e / v6e: 128 MiB physical VMEM
        return 48 * 1024 * 1024
    return 32 * 1024 * 1024           # v7x: 64 MiB per TensorCore


def _pick_block_rows(rows: int, hidden: int, itemsize: int,
                     vmem_limit_bytes: int) -> int:
    # Native sublane tile for the dtype: 8 for f32, 16 for bf16, 32 for int8.
    sublane = max(8, 32 // max(itemsize, 1))

    # Per-row VMEM cost:
    #  * pipeline DMA: 2 buffers each for the input tile and the output tile,
    #  * in-kernel f32 working set: ~3 hidden-wide f32 intermediates
    #    (x, x - mean, pre-store expression) live across the reductions.
    io_bytes = 2 * hidden * itemsize * 2
    work_bytes = 3 * hidden * 4
    bytes_per_row = io_bytes + work_bytes

    # Leave ~8 MiB headroom below the scoped limit for Mosaic scratch,
    # semaphores and the (2, hidden) param tile.
    budget = max(vmem_limit_bytes - 8 * 1024 * 1024, 1 * 1024 * 1024)

    br = budget // max(bytes_per_row, 1)
    br = min(br, _MAX_BLOCK_ROWS)

    # Always leave >= 2 grid steps (v7x megacore sharding + DMA overlap).
    br = min(br, _round_up(pl.cdiv(rows, 2), sublane))
    # Prefer >= 8 steps when blocks stay big enough to amortize per-step cost.
    br8 = _round_up(pl.cdiv(rows, 8), sublane)
    if br8 >= 512:
        br = min(br, br8)

    br = max(sublane, (br // sublane) * sublane)       # sublane granularity
    br = min(br, _round_up(rows, sublane))             # never larger than needed
    return br


def layernorm_pallas(x, weight, bias=None, *, eps: float = 1e-12,
                     block_rows: int | None = None):
    """LayerNorm over the last dim of x.  x: (..., hidden)."""
    orig_shape = x.shape
    hidden = orig_shape[-1]
    x2d = x.reshape(-1, hidden)
    rows = x2d.shape[0]

    vmem_limit = _scoped_vmem_limit_bytes()
    if block_rows is None:
        block_rows = _pick_block_rows(rows, hidden,
                                      jnp.dtype(x.dtype).itemsize, vmem_limit)

    # Pack weight/bias into one (2, hidden) f32 array, cast once here (tiny
    # arrays, hoisted out of the grid loop; constant block index -> DMA elided).
    w32 = weight.astype(jnp.float32).reshape(1, hidden)
    if bias is None:
        b32 = jnp.zeros((1, hidden), jnp.float32)
    else:
        b32 = bias.astype(jnp.float32).reshape(1, hidden)
    wb = jnp.concatenate([w32, b32], axis=0)  # (2, hidden)

    # Ragged grid: Pallas read-pads and store-masks the last block, so no
    # jnp.pad / output slice (each of which would cost an extra HBM pass).
    grid = (pl.cdiv(rows, block_rows),)

    # NOTE: for real model hidden sizes (multiples of 128) the output store is
    # lane-dense (unmasked vst); for tiny hidden (like the demo's 32) stores
    # are masked, which is functionally fine.  If small-hidden workloads ever
    # matter for perf, fold k rows into the lane dim in this wrapper instead.

    out = pl.pallas_call(
        functools.partial(_layernorm_kernel, eps=eps, hidden=hidden),
        out_shape=jax.ShapeDtypeStruct((rows, hidden), x.dtype),
        grid_spec=pltpu.PrefetchScalarGridSpec(
            num_scalar_prefetch=0,
            grid=grid,
            in_specs=[
                pl.BlockSpec((block_rows, hidden), lambda i: (i, 0)),
                pl.BlockSpec((2, hidden), lambda i: (0, 0)),
            ],
            out_specs=pl.BlockSpec((block_rows, hidden), lambda i: (i, 0)),
        ),
        compiler_params=pltpu.CompilerParams(
            dimension_semantics=("parallel",),
            vmem_limit_bytes=vmem_limit,
        ),
    )(x2d, wb)

    return out.reshape(orig_shape)


def _ref_layernorm(x, w, b, eps):
    x = x.astype(jnp.float32)
    mean = jnp.mean(x, axis=-1, keepdims=True)
    var = jnp.mean((x - mean) ** 2, axis=-1, keepdims=True)
    return (x - mean) / jnp.sqrt(var + eps) * w + b


if __name__ == "__main__":
    hidden_size = 32
    batch, seq = 2, 8
    eps = 1e-12

    key = jax.random.PRNGKey(0)
    x = jax.random.normal(key, (batch, seq, hidden_size), dtype=jnp.float32)

    # Deterministic parameter init matching nn.Parameter(torch.ones/zeros(hidden)).
    weight = jnp.ones((hidden_size,), dtype=jnp.float32)
    bias = jnp.zeros((hidden_size,), dtype=jnp.float32)

    out = jax.block_until_ready(layernorm_pallas(x, weight, bias, eps=eps))
    ref = _ref_layernorm(x, weight, bias, eps)
    assert out.shape == x.shape
    assert jnp.max(jnp.abs(out - ref)) < 1e-4

    # Ragged row count (not a multiple of the sublane tile) + use_bias=False:
    # exercises the pad-free edge-block path (read-padded / store-masked).
    x2 = jax.random.normal(jax.random.PRNGKey(1), (5, hidden_size),
                           dtype=jnp.float32)
    out2 = jax.block_until_ready(layernorm_pallas(x2, weight, bias=None, eps=eps))
    ref2 = _ref_layernorm(x2, weight, jnp.zeros((hidden_size,)), eps)
    assert out2.shape == x2.shape
    assert jnp.max(jnp.abs(out2 - ref2)) < 1e-4

    # bf16 path with a lane-dense hidden size: exercises the 16-row sublane
    # rounding and the f32-working-set-aware block sizing.
    hb = 256
    xb = jax.random.normal(jax.random.PRNGKey(2), (4, 128, hb),
                           dtype=jnp.float32).astype(jnp.bfloat16)
    wb16 = jnp.ones((hb,), dtype=jnp.bfloat16)
    bb16 = jnp.zeros((hb,), dtype=jnp.bfloat16)
    out3 = jax.block_until_ready(layernorm_pallas(xb, wb16, bb16, eps=1e-5))
    ref3 = _ref_layernorm(xb.astype(jnp.float32), 1.0, 0.0, 1e-5)
    assert out3.shape == xb.shape and out3.dtype == jnp.bfloat16
    assert jnp.max(jnp.abs(out3.astype(jnp.float32) - ref3)) < 5e-2

    print("KERNEL_OK")
</pallas_src>

<mosaic_0001>
module attributes {stable_mosaic.version = 11 : i64} {
  func.func @_layernorm_kernel(%arg0: i32, %arg1: memref<8x32xf32, #tpu.memory_space<vmem>>, %arg2: memref<2x32xf32, #tpu.memory_space<vmem>>, %arg3: memref<8x32xf32, #tpu.memory_space<vmem>>) attributes {dimension_semantics = [#tpu.dimension_semantics<parallel>], iteration_bounds = array<i64: 2>, scalar_prefetch = 0 : i64, scratch_operands = 0 : i64, tpu.core_type = #tpu.core_type<tc>, window_params = [{transform_indices = @transform_0, window_bounds = array<i64: 8, 32>}, {pipeline_mode = #tpu.pipeline_mode<synchronous>, transform_indices = @transform_1, window_bounds = array<i64: 2, 32>}, {transform_indices = @transform_2, window_bounds = array<i64: 8, 32>}]} {
    %c0 = arith.constant 0 : index
    %c0_0 = arith.constant 0 : index
    %0 = vector.load %arg1[%c0, %c0_0] : memref<8x32xf32, #tpu.memory_space<vmem>>, vector<8x32xf32>
    %cst = arith.constant dense<0.000000e+00> : vector<8xf32>
    %1 = vector.multi_reduction <add>, %0, %cst [1] : vector<8x32xf32> to vector<8xf32>
    %2 = vector.shape_cast %1 : vector<8xf32> to vector<8x1xf32>
    %cst_1 = arith.constant 3.125000e-02 : f32
    %3 = vector.broadcast %cst_1 : f32 to vector<8x1xf32>
    %4 = arith.mulf %2, %3 : vector<8x1xf32>
    %5 = vector.broadcast %4 : vector<8x1xf32> to vector<8x32xf32>
    %6 = arith.subf %0, %5 : vector<8x32xf32>
    %7 = arith.mulf %6, %6 : vector<8x32xf32>
    %cst_2 = arith.constant dense<0.000000e+00> : vector<8xf32>
    %8 = vector.multi_reduction <add>, %7, %cst_2 [1] : vector<8x32xf32> to vector<8xf32>
    %9 = vector.shape_cast %8 : vector<8xf32> to vector<8x1xf32>
    %cst_3 = arith.constant 3.125000e-02 : f32
    %10 = vector.broadcast %cst_3 : f32 to vector<8x1xf32>
    %11 = arith.mulf %9, %10 : vector<8x1xf32>
    %cst_4 = arith.constant 9.99999996E-13 : f32
    %12 = vector.broadcast %cst_4 : f32 to vector<8x1xf32>
    %13 = arith.addf %11, %12 : vector<8x1xf32>
    %14 = math.rsqrt %13 : vector<8x1xf32>
    %c0_5 = arith.constant 0 : index
    %c0_6 = arith.constant 0 : index
    %15 = vector.load %arg2[%c0_5, %c0_6] : memref<2x32xf32, #tpu.memory_space<vmem>>, vector<1x32xf32>
    %c1 = arith.constant 1 : index
    %c0_7 = arith.constant 0 : index
    %16 = vector.load %arg2[%c1, %c0_7] : memref<2x32xf32, #tpu.memory_space<vmem>>, vector<1x32xf32>
    %17 = vector.broadcast %14 : vector<8x1xf32> to vector<8x32xf32>
    %18 = arith.mulf %6, %17 : vector<8x32xf32>
    %19 = vector.broadcast %15 : vector<1x32xf32> to vector<8x32xf32>
    %20 = arith.mulf %18, %19 : vector<8x32xf32>
    %21 = vector.broadcast %16 : vector<1x32xf32> to vector<8x32xf32>
    %22 = arith.addf %20, %21 : vector<8x32xf32>
    %c0_8 = arith.constant 0 : index
    %c0_9 = arith.constant 0 : index
    %23 = vector.load %arg3[%c0_8, %c0_9] : memref<8x32xf32, #tpu.memory_space<vmem>>, vector<8x32xf32>
    tpu.vector_store %arg3[%c0_8, %c0_9], %22 {strides = array<i32>} : memref<8x32xf32, #tpu.memory_space<vmem>>, vector<8x32xf32>,
    return
  }
  func.func @transform_0(%arg0: i32) -> (i32, i32) {
    %c0_i32 = arith.constant 0 : i32
    %c0_i32_0 = arith.constant 0 : i32
    return %arg0, %c0_i32 : i32, i32
  }
  func.func @transform_1(%arg0: i32) -> (i32, i32) {
    %c0_i32 = arith.constant 0 : i32
    %c0_i32_0 = arith.constant 0 : i32
    %c0_i32_1 = arith.constant 0 : i32
    return %c0_i32, %c0_i32_0 : i32, i32
  }
  func.func @transform_2(%arg0: i32) -> (i32, i32) {
    %c0_i32 = arith.constant 0 : i32
    %c0_i32_0 = arith.constant 0 : i32
    return %arg0, %c0_i32 : i32, i32
  }
}

</mosaic_0001>

<bundles_post_ra>
// kernel: tpu_custom_call.1
= control target key start
LH: loop header
LB: loop body
LE: loop exit
PB: predicated region body
PF: predicated region fallthrough
CT: control target
= control target key end

     0   :  { %7 = vsyncpa [#allocation3], 0  ;;  %s618_s0 = inlined_call_operand.hbm [shape: f32[16,32], index: 0, kind: input, shape index: {}]   ;;  %s619_s1 = inlined_call_operand.vmem [shape: f32[2,32], index: 1, kind: input, shape index: {}]   ;;  %s620_s2 = inlined_call_operand.hbm [shape: f32[16,32], index: 2, kind: output, shape index: {}]  }
   0x1   :  { %9 = vsyncpa [#allocation3 + $0x1], 0 }
   0x2   :  { %10 = vsyncpa [#allocation4], 0 }
   0x3   :  { %12 = vsyncpa [#allocation4 + $0x1], 0  ;;  %s448_s9 = smov 0   ;;  %s450_s10 = smov 0  }
   0x4   :  { %s452_s11 = smov 0   ;;  %s454_s12 = smov 0  }
   0x5 LB: > { %s469_s13 = sadd.s32 4294967295, %s429_s12   ;;  %s271_s14 = sadd.s32 4294967294, %s429_s12   ;;  %s429_s12 = sphi %s454_s12, %s635_s12   ;;  %s425_s11 = sphi %s452_s11, %s634_s11   ;;  %s421_s10 = sphi %s450_s10, %s633_s10   ;;  %s417_s9 = sphi %s448_s9, %s632_s9  }
   0x6   : > { %s473_s15 = sadd.s32 1, %s429_s12   ;;  %s25_s16 = sadd.s32 1, %s425_s11 }
   0x7   : > { %s22_s17 = ssub.s32 %s429_s12, %s473_s15  ;;  %p32_p0 = scmp.ne.s32.totalorder %s425_s11, %s421_s10 }
   0x8   : > { %p23_p1 = scmp.eq.s32.totalorder %s22_s17, 0  ;;  %p33_p2 = scmp.eq.s32.totalorder %s429_s12, 0 }
   0x9   : > { %p38_p3 = scmp.ne.s32.totalorder %s421_s10, %s417_s9  ;;  %p39_p4 = scmp.eq.s32.totalorder %s469_s13, 0 }
   0xa   : > { %s485_s18 = scalar_select %p23_p1, %s425_s11, %s25_s16  }
   0xb   : > { %p487_p5 = por %p33_p2, %p32_p0  ;;  %p491_p6 = por %p39_p4, %p38_p3 }
   0xc   : > { %p83_p7 = scmp.eq.s32.totalorder %s469_s13, 1  ;;  %p89_p8 = scmp.eq.s32.totalorder %s271_s14, 1 }
   0xd   : > { %p297_p10 = scmp.lt.s32.totalorder %s429_s12, 2  ;;  %s112_s23 = sand.u32 1, %s425_s11  }
   0xe   : > { %p498_p11 = por %p83_p7, %p32_p0  ;;  %p502_p12 = por %p89_p8, %p38_p3 }
   0xf   : > { %s275_s24 = sshll.u32 %s429_s12, 7  ;;  %s274_s25 = sshll.u32 %s112_s23, 3 }
  0x10   : > { %s624_s21 = scalar_select %p498_p11, 1, 0 }
  0x11   : > { %s625_s22 = scalar_select %p502_p12, 1, 0 }
  0x12   : > { %s511_s28 = scalar_lea.hbm %s618_s0, %s275_s24  ;;  %s116_s29 = scalar_lea.vmem [#allocation2], %s274_s25 }
  0x13   : > { %s123_s30 = sshll.u32 %s116_s29, 4  ;;  %p515_p13 = pnand %p297_p10, %p487_p5  ;;  %s519_s30 = int_to_ptr.vmem [resolvable:$true] %s123_s30 }
  0x14   : > { %s113_s4 = scalar_lea.sflag [#allocation3], %s112_s23  ;;  %s333_s5 = scalar_lea.hbm %s511_s28, 128 }
  0x15   : > { %p334_p2 = scmp.ne.s32.totalorder %s511_s28, %s333_s5  ;;  %p335_p3 = pneg %p515_p13 }
  0x16   : > { %s338_s8 = scalar_lea.hbm %s618_s0, 256  ;;  %p339_p5 = scmp.lt.u32.totalorder %s511_s28, %s618_s0 }
  0x17   : > { %p336_p4 = pnand %p335_p3, %p334_p2  ;;  %p340_p8 = scmp.lt.u32.totalorder %s338_s8, %s333_s5 }
  0x18   : > { %p342_p9 = scmp.lt.u32.totalorder %s333_s5, %s511_s28 }
  0x19   : > { %p337_p7 = pneg %p336_p4  ;;  %p341_p10 = por %p340_p8, %p339_p5 }
  0x1b   : > { %p343_p0 = por %p342_p9, %p341_p10 }
  0x1d   : > { %p344_p1 = pnand %p343_p0, %p337_p7 }
  0x1f   : > { %347 = shalt.err (!%p344_p1)
}
  0x20   : > { %s348_s17 = scalar_lea.vmem %s519_s30, 128  ;;  %s431_s19 = smov [#allocation2]  }
  0x21   : > { %p349_p2 = scmp.ne.s32.totalorder %s519_s30, %s348_s17  ;;  %s353_s23 = sshll.u32 %s431_s19, 4  ;;  %s354_s23 = int_to_ptr.vmem [resolvable:$false] %s353_s23 }
  0x22   : > { %s355_s24 = scalar_lea.vmem %s354_s23, 256  ;;  %p356_p11 = scmp.lt.s32.totalorder %s519_s30, %s354_s23 }
  0x23   : > { %p351_p4 = pnand %p349_p2, %p335_p3  ;;  %p357_p5 = scmp.lt.s32.totalorder %s355_s24, %s348_s17 }
  0x25   : > { %p352_p12 = pneg %p351_p4  ;;  %p358_p8 = por %p357_p5, %p356_p11 }
  0x27   : > { %p359_p9 = pnand %p358_p8, %p352_p12 }
  0x29   : > { %362 = shalt.err (!%p359_p9)
}
  0x2a   : > { %292 = dma.hbm_to_vmem [thread:$0]  (!%p515_p13), %s511_s28, 128, %s519_s30, %s113_s4  }
  0x2b   : > { %p627_p0 = scmp.lt.s32.totalorder %s429_s12, 3  ;;  %p628_p1 = scmp.ge.s32.totalorder %s429_s12, 1 }
  0x2d   : > { %p129_p3 = pnand %p628_p1, %p627_p0 }
  0x2e   : > { %s553_s25 = sand.u32 (!%p129_p3), 1, %s421_s10  }
  0x2f   : > { %132 = sbr.rel (%p129_p3) target bundleno = 383 (0x17f), region = 28  ;;  %s277_s26 = sshll.u32 (!%p129_p3), %s553_s25, 3 }
  0x30   : > { %s135_s27 = scalar_lea.sflag (!%p129_p3), [#allocation3], %s553_s25  ;;  %s138_s29 = scalar_lea.vmem (!%p129_p3), [#allocation2], %s277_s26 }
  0x36   : > { %408 = dma.done.wait (%p491_p6), %s135_s27, 128  }
  0x37   : > { %410 = vsyncadd (%p491_p6), %s135_s27, 4294967168  ;;  %vm160_vm0 = vcmask 261120   ;;  %v159_v0 = vld [vmem:[%s138_s29] sm:$0xff]  ;;  %s282_s4 = sshll.u32 %s469_s13, 7  ;;  %s158_s5 = scalar_lea.vmem [#allocation5], %s277_s26 }
  0x38   : > { %v161_v1 = vsel %vm160_vm0, %v159_v0, 0.0  ;;  %v279_v11 = vld [vmem:[%s619_s1] ss:$0 sm:$0xff]  ;;  %v280_v13 = vld [vmem:[%s619_s1 + $0x1] ss:$0 sm:$0xff]  ;;  %s201_s6 = sshll.u32 %s158_s5, 4  ;;  %s573_s14 = scalar_lea.hbm %s620_s2, %s282_s4  ;;  %s575_s6 = int_to_ptr.vmem [resolvable:$true] %s201_s6 }
  0x39   : > { %162 = vadd.xlane.f32.xlu0 %v161_v1  ;;  %s188_s16 = scalar_lea.sflag [#allocation4], %s553_s25  ;;  %s363_s17 = scalar_lea.vmem %s575_s6, 128 }
  0x3a   : > { %p364_p6 = scmp.ne.s32.totalorder %s575_s6, %s363_s17  ;;  %p629_p11 = scmp.ne.s32.totalorder %s624_s21, 0 }
  0x3b   : > { %s432_s13 = smov [#allocation5]  }
  0x3c   : > { %p365_p12 = pnand %p364_p6, %p629_p11  ;;  %s367_s19 = sshll.u32 %s432_s13, 4  ;;  %s368_s19 = int_to_ptr.vmem [resolvable:$false] %s367_s19 }
  0x3d   : > { %s369_s23 = scalar_lea.vmem %s368_s19, 256  ;;  %p370_p7 = scmp.lt.s32.totalorder %s575_s6, %s368_s19 }
  0x3e   : > { %p366_p13 = pneg %p365_p12  ;;  %p371_p10 = scmp.lt.s32.totalorder %s369_s23, %s363_s17 }
  0x40   : > { %p372_p2 = por %p371_p10, %p370_p7 }
  0x42   : > { %p373_p4 = pnand %p372_p2, %p366_p13 }
  0xc6   : > { %v163_v2 = vpop.xlane.xlu0 %162 }
  0xc7   : > { %v164_v3 = vmul.f32 0.03125, %v163_v2 }
  0xc9   : > { %v165_v4 = vsub.f32 %v159_v0, %v164_v3 }
  0xcb   : > { %v166_v5 = vmul.f32 %v165_v4, %v165_v4 }
  0xcd   : > { %v167_v6 = vsel %vm160_vm0, %v166_v5, 0.0 }
  0xce   : > { %168 = vadd.xlane.f32.xlu0 %v167_v6 }
 0x15b   : > { %v169_v7 = vpop.xlane.xlu0 %168 }
 0x15c   : > { %v170_v8 = vmul.f32 0.03125, %v169_v7 }
 0x15e   : > { %v171_v9 = vadd.f32 1e-12, %v170_v8 }
 0x160   : > { %331 = vrsqrt.f32 %v171_v9 }
 0x16a   : > { %v332_v10 = vpop.eup %331 }
 0x16b   : > { %v175_v12 = vmul.f32 %v332_v10, %v165_v4 }
 0x16d   : > { %v180_v14 = vmul.f32 %v279_v11, %v175_v12 }
 0x16f   : > { %v185_v15 = vadd.f32 %v280_v13, %v180_v14 }
 0x171   : > { %186 = vst.msk [vmem:[%s158_s5] sm:$0xff] %vm160_vm0, %v185_v15 }
 0x172   : > { %376 = shalt.err (!%p373_p4)
}
 0x173   : > { %s377_s24 = scalar_lea.hbm %s573_s14, 128  ;;  %s381_s27 = scalar_lea.hbm %s620_s2, 256 }
 0x174   : > { %p378_p5 = scmp.ne.s32.totalorder %s573_s14, %s377_s24  ;;  %p382_p0 = scmp.lt.u32.totalorder %s573_s14, %s620_s2 }
 0x175   : > { %p383_p1 = scmp.lt.u32.totalorder %s381_s27, %s377_s24  ;;  %p385_p6 = scmp.lt.u32.totalorder %s377_s24, %s573_s14 }
 0x176   : > { %p379_p8 = pnand %p378_p5, %p629_p11 }
 0x177   : > { %p384_p3 = por %p383_p1, %p382_p0 }
 0x178   : > { %p380_p9 = pneg %p379_p8 }
 0x179   : > { %p386_p12 = por %p385_p6, %p384_p3 }
 0x17b   : > { %p387_p13 = pnand %p386_p12, %p380_p9 }
 0x17d   : > { %390 = shalt.err (!%p387_p13)
}
 0x17e   : > { %287 = dma.vmem_to_hbm [thread:$0]  (%p629_p11), %s575_s6, 128, %s573_s14, %s188_s16  }
 0x17f PF: > { %s213_s28 = sand.u32 1, %s417_s9   ;;  %p630_p7 = scmp.ne.s32.totalorder %s625_s22, 0 }
 0x180   : > { %p631_p10 = scmp.ge.s32.totalorder %s429_s12, 2  ;;  %s214_s30 = scalar_lea.sflag [#allocation4], %s213_s28 }
 0x182   : > { %p294_p2 = pnand %p631_p10, %p630_p7 }
 0x184   : > { %412 = dma.done.wait (!%p294_p2), %s214_s30, 128  }
 0x185   : > { %414 = vsyncadd (!%p294_p2), %s214_s30, 4294967168  ;;  %p15_p4 = scmp.ge.s32.totalorder %s473_s15, 4   ;;  %s632_s9 = smov %s421_s10 }
 0x186   : > { %s633_s10 = smov %s425_s11  ;;  %s634_s11 = smov %s485_s18 }
 0x187   : > { %s635_s12 = smov %s473_s15  ;;  %17 = sbr.rel (!%p15_p4) target bundleno = 5 (0x5), region = 73 }
 0x18e   :  { %219 = vsyncpa [#allocation3], 1 }
 0x18f   :  { %221 = vsyncpa [#allocation3 + $0x1], 1 }
 0x190   :  { %222 = vsyncpa [#allocation4], 1 }
 0x191   :  { %224 = vsyncpa [#allocation4 + $0x1], 1 }

</bundles_post_ra>
